<compile_context>
chip_gen: v7x
topology: tpu7x:2x2x1
jax: 0.10.0
libtpu: 0.0.40
codegen_flags: <defaults>
</compile_context>

<pallas_src>
import functools
import math

import jax
import jax.numpy as jnp
import numpy as np
from jax import lax
from jax.experimental import pallas as pl
from jax.experimental.pallas import tpu as pltpu


_VMEM_LIMIT_BYTES = 48 * 1024 * 1024   # raised vs. default, below v7x's 64 MiB
_MASK_BIG = 1e30                        # additive "-inf" surrogate for non-edges


def _round_up(v, m):
    return (v + m - 1) // m * m


# ----------------------------------------------------------------------------
# Kernel 1: projection pre-pass (runs once per layer, hoisted out of the grid)
#   xp     = x @ W                [Np, H*C]   stored bf16 for the MXU aggregation
#   a_srcT = asrc_rows . xp^T     [H,  Np]    NT dot_general -> no transposes
#   a_dst  = xp @ adst_cols       [Np, H]
# ----------------------------------------------------------------------------
def _project_kernel(x_ref, w_ref, asrc_rows_ref, adst_cols_ref,
                    xp_ref, asrct_ref, adst_ref):
    # Kept in f32: this matmul runs once with K = Fin (tiny vs. the K = Np
    # aggregation) and f32 keeps the attention logits accurate.  Cast the
    # operands to bf16 here too if Fin is large.
    xp = jnp.dot(x_ref[...], w_ref[...], preferred_element_type=jnp.float32)
    xp_ref[...] = xp.astype(jnp.bfloat16)
    asrct_ref[...] = lax.dot_general(asrc_rows_ref[...], xp,
                                     (((1,), (1,)), ((), ())),
                                     preferred_element_type=jnp.float32)
    adst_ref[...] = jnp.dot(xp, adst_cols_ref[...],
                            preferred_element_type=jnp.float32)


def gat_project(x, w, asrc_rows, adst_cols, *, tile):
    n_pad, fin = x.shape
    heads, hc = asrc_rows.shape
    return pl.pallas_call(
        _project_kernel,
        out_shape=(jax.ShapeDtypeStruct((n_pad, hc), jnp.bfloat16),
                   jax.ShapeDtypeStruct((heads, n_pad), jnp.float32),
                   jax.ShapeDtypeStruct((n_pad, heads), jnp.float32)),
        grid=(n_pad // tile,),
        in_specs=[pl.BlockSpec((tile, fin), lambda i: (i, 0)),
                  pl.BlockSpec(w.shape, lambda i: (0, 0)),
                  pl.BlockSpec(asrc_rows.shape, lambda i: (0, 0)),
                  pl.BlockSpec(adst_cols.shape, lambda i: (0, 0))],
        out_specs=(pl.BlockSpec((tile, hc), lambda i: (i, 0)),
                   pl.BlockSpec((heads, tile), lambda i: (0, i)),
                   pl.BlockSpec((tile, heads), lambda i: (i, 0))),
        compiler_params=pltpu.CompilerParams(
            dimension_semantics=("parallel",),
            vmem_limit_bytes=_VMEM_LIMIT_BYTES),
    )(x, w, asrc_rows, adst_cols)


# ----------------------------------------------------------------------------
# Kernel 2: source-blocked GAT attention with online softmax
# ----------------------------------------------------------------------------
def _attn_accumulate(adst_ref, asrct_ref, xp_ref, adj_ref, m_scr, l_scr, acc_scr,
                     *, heads, c, negative_slope):
    """Online-softmax accumulation for one (dst-tile, src-tile) grid step."""
    @pl.when(pl.program_id(1) == 0)
    def _init():
        m_scr[...] = jnp.full_like(m_scr, -_MASK_BIG)
        l_scr[...] = jnp.zeros_like(l_scr)
        acc_scr[...] = jnp.zeros_like(acc_scr)

    # Additive mask bias: 0 on edges, -1e30 elsewhere.  Computed once per tile
    # (not per head).  Masked entries underflow to exp -> 0 against any real
    # max; an all-masked block is rescaled to zero by the online max update as
    # soon as a real entry (every row has a self-loop) is seen.
    mask_bias = (adj_ref[...].astype(jnp.float32) - 1.0) * jnp.float32(_MASK_BIG)

    a_dst = adst_ref[...]           # [Td, H]   f32
    a_srct = asrct_ref[...]         # [H,  Ts]  f32
    xp = xp_ref[...]                # [Ts, H*C] bf16
    slope = jnp.float32(negative_slope)

    for h in range(heads):                                    # static unroll
        cols = slice(h * c, (h + 1) * c)
        # e[i, j] = leaky_relu(a_dst[i] + a_src[j]) for edge j -> i
        e = a_dst[:, h:h + 1] + a_srct[h:h + 1, :]            # [Td, Ts]
        e = jnp.maximum(e, slope * e) + mask_bias             # leaky (0<=slope<1)

        m_prev = m_scr[:, h:h + 1]
        m_new = jnp.maximum(m_prev, jnp.max(e, axis=-1, keepdims=True))
        alpha = jnp.exp(m_prev - m_new)
        p = jnp.exp(e - m_new)                                # [Td, Ts] f32
        l_scr[:, h:h + 1] = (alpha * l_scr[:, h:h + 1]
                             + jnp.sum(p, axis=-1, keepdims=True))
        # Dominant MXU matmul (K = Ts): bf16 operands, f32 accumulation.
        pv = jnp.dot(p.astype(jnp.bfloat16), xp[:, cols],
                     preferred_element_type=jnp.float32)      # [Td, C]
        acc_scr[:, cols] = alpha * acc_scr[:, cols] + pv      # static column slab
        m_scr[:, h:h + 1] = m_new


def _attn_epilogue(bias_ref, l_scr, acc_scr, *, heads, c):
    """Normalize each head slab in place, add bias, ReLU (padded lanes stay 0)."""
    for h in range(heads):
        cols = slice(h * c, (h + 1) * c)
        acc_scr[:, cols] = acc_scr[:, cols] * pl.reciprocal(
            l_scr[:, h:h + 1], approx=True)                   # EUP divide
    return jnp.maximum(acc_scr[...] + bias_ref[...], 0.0)     # bias + ReLU


def _gat_attn_kernel(adst_ref, asrct_ref, xp_ref, adj_ref, bias_ref, o_ref,
                     m_scr, l_scr, acc_scr, *, heads, c, negative_slope):
    _attn_accumulate(adst_ref, asrct_ref, xp_ref, adj_ref, m_scr, l_scr, acc_scr,
                     heads=heads, c=c, negative_slope=negative_slope)

    @pl.when(pl.program_id(1) == pl.num_programs(1) - 1)
    def _finalize():
        o_ref[...] = _attn_epilogue(bias_ref, l_scr, acc_scr, heads=heads, c=c)


def _gat_attn_norm_kernel(adst_ref, asrct_ref, xp_ref, adj_ref, bias_ref,
                          bn_g_ref, bn_b_ref, bn_m_ref, bn_v_ref,
                          ln_g_ref, ln_b_ref, o_ref, m_scr, l_scr, acc_scr,
                          *, heads, c, out_dim, negative_slope):
    """GATConv + ReLU with BatchNorm1d(eval) + LayerNorm fused into the epilogue."""
    _attn_accumulate(adst_ref, asrct_ref, xp_ref, adj_ref, m_scr, l_scr, acc_scr,
                     heads=heads, c=c, negative_slope=negative_slope)

    @pl.when(pl.program_id(1) == pl.num_programs(1) - 1)
    def _finalize():
        out = _attn_epilogue(bias_ref, l_scr, acc_scr, heads=heads, c=c)
        eps = jnp.float32(1e-5)
        # BatchNorm1d (eval: running stats) -> per-feature affine.
        xb = (out - bn_m_ref[...]) * lax.rsqrt(bn_v_ref[...] + eps)
        xb = xb * bn_g_ref[...] + bn_b_ref[...]
        # LayerNorm over the REAL feature columns only (output lane dim is
        # padded to 128 for dense stores -> mask the padded lanes in the stats).
        out_pad = xb.shape[-1]
        lane = lax.broadcasted_iota(jnp.int32, (1, out_pad), 1)
        valid = (lane < out_dim).astype(jnp.float32)
        inv_d = jnp.float32(1.0 / out_dim)
        mu = jnp.sum(xb * valid, axis=-1, keepdims=True) * inv_d
        xc = (xb - mu) * valid
        var = jnp.sum(xc * xc, axis=-1, keepdims=True) * inv_d
        o_ref[...] = xc * lax.rsqrt(var + eps) * ln_g_ref[...] + ln_b_ref[...]


def gat_attention_layer(a_dst, a_srct, xp, adj, bias, *, heads, c, negative_slope,
                        tile_dst, tile_src, norm_params=None, out_dim=None):
    n_pad = a_dst.shape[0]
    out_pad = bias.shape[1]
    grid = (n_pad // tile_dst, n_pad // tile_src)

    def resident(arr):
        return pl.BlockSpec(arr.shape, lambda i, j: (0, 0))

    in_specs = [
        pl.BlockSpec((tile_dst, heads), lambda i, j: (i, 0)),      # a_dst tile
        pl.BlockSpec((heads, tile_src), lambda i, j: (0, j)),      # a_src^T tile
        pl.BlockSpec((tile_src, heads * c), lambda i, j: (j, 0)),  # xp src tile bf16
        pl.BlockSpec((tile_dst, tile_src), lambda i, j: (i, j)),   # adj block int8
        resident(bias),
    ]
    args = [a_dst, a_srct, xp, adj, bias]

    if norm_params is None:
        kernel = functools.partial(_gat_attn_kernel, heads=heads, c=c,
                                   negative_slope=negative_slope)
    else:
        for p in norm_params:
            in_specs.append(resident(p))
            args.append(p)
        kernel = functools.partial(_gat_attn_norm_kernel, heads=heads, c=c,
                                   out_dim=out_dim, negative_slope=negative_slope)

    return pl.pallas_call(
        kernel,
        out_shape=jax.ShapeDtypeStruct((n_pad, out_pad), jnp.float32),
        grid=grid,
        in_specs=in_specs,
        out_specs=pl.BlockSpec((tile_dst, out_pad), lambda i, j: (i, 0)),
        scratch_shapes=[pltpu.VMEM((tile_dst, heads), jnp.float32),    # running max
                        pltpu.VMEM((tile_dst, heads), jnp.float32),    # running denom
                        pltpu.VMEM((tile_dst, out_pad), jnp.float32)], # accumulator
        compiler_params=pltpu.CompilerParams(
            dimension_semantics=("parallel", "arbitrary"),
            vmem_limit_bytes=_VMEM_LIMIT_BYTES),
    )(*args)


# ----------------------------------------------------------------------------
# Wrapper
# ----------------------------------------------------------------------------
def _block_attention_matrix(att, heads, c):
    """[H, C] per-head attention vectors -> block-diagonal [H*C, H] matrix."""
    mat = jnp.zeros((heads * c, heads), jnp.float32)
    for h in range(heads):
        mat = mat.at[h * c:(h + 1) * c, h].set(att[h])
    return mat


def _pad_row(p, width):
    return jnp.pad(p.astype(jnp.float32), ((0, 0), (0, width - p.shape[1])))


def gat_forward(x, edge_index, params, *, nheads, nhid, noutput, negative_slope,
                tile_dst=128, tile_src=128):
    """Eval-mode GAT forward.  tile_dst/tile_src ~128 on v7x (64 MiB VMEM),
    256-512 source tiles on v5e/v6e (128 MiB VMEM)."""
    assert tile_dst % 32 == 0, "int8 adjacency needs tile_dst % 32 == 0"
    assert tile_src % 128 == 0, "adjacency lane dim needs tile_src % 128 == 0"
    n = x.shape[0]
    lcm = tile_dst * tile_src // math.gcd(tile_dst, tile_src)
    n_pad = _round_up(n, lcm)

    x_p = jnp.pad(x.astype(jnp.float32), ((0, n_pad - n), (0, 0)))

    # Dense adjacency mask adj[dst, src] built DIRECTLY in int8 (single O(N^2)
    # stream, no f32 intermediate), with self-loops on every row (incl. padded)
    # so every softmax row has >= 1 valid entry.
    adj = jnp.zeros((n_pad, n_pad), jnp.int8)
    adj = adj.at[edge_index[1], edge_index[0]].set(jnp.int8(1))
    diag = jnp.arange(n_pad)
    adj = adj.at[diag, diag].set(jnp.int8(1))

    # Lane-dense (multiple-of-128) output widths; sliced back at the very end.
    out1_pad = _round_up(nheads * nhid, 128)
    out2_pad = _round_up(noutput, 128)

    # Block layouts of the attention vectors (all heads in one matmul).
    adst_cols1 = _block_attention_matrix(params["adst1"], nheads, nhid)    # [H*C, H]
    asrc_rows1 = _block_attention_matrix(params["asrc1"], nheads, nhid).T  # [H, H*C]
    adst_cols2 = _block_attention_matrix(params["adst2"], 1, noutput)
    asrc_rows2 = _block_attention_matrix(params["asrc2"], 1, noutput).T

    bias1 = _pad_row(params["bias1"], out1_pad)
    bias2 = _pad_row(params["bias2"], out2_pad)
    norm_params = tuple(_pad_row(params[k], out2_pad)
                        for k in ("bn_g", "bn_b", "bn_m", "bn_v", "ln_g", "ln_b"))
    # W2 consumes layer 1's lane-padded output -> zero-pad its rows to match.
    w2_p = jnp.pad(params["w2"].astype(jnp.float32),
                   ((0, out1_pad - params["w2"].shape[0]), (0, 0)))

    # ---- layer 1: GATConv(nfeat -> nhid, heads=nheads, concat=True) + ReLU ----
    xp1, asrct1, adst1 = gat_project(x_p, params["w1"], asrc_rows1, adst_cols1,
                                     tile=tile_src)
    h1 = gat_attention_layer(adst1, asrct1, xp1, adj, bias1,
                             heads=nheads, c=nhid, negative_slope=negative_slope,
                             tile_dst=tile_dst, tile_src=tile_src)

    # ---- layer 2: GATConv(nhid*nheads -> noutput, heads=1, concat=False) + ReLU
    #      + BatchNorm1d(eval) + LayerNorm fused into the attention kernel.
    #      (single head: concat=False's mean-over-heads is the identity)
    xp2, asrct2, adst2 = gat_project(h1, w2_p, asrc_rows2, adst_cols2,
                                     tile=tile_src)
    out = gat_attention_layer(adst2, asrct2, xp2, adj, bias2,
                              heads=1, c=noutput, negative_slope=negative_slope,
                              tile_dst=tile_dst, tile_src=tile_src,
                              norm_params=norm_params, out_dim=noutput)

    return out[:n, :noutput]


# ----------------------------------------------------------------------------
# Pure-JAX reference (eval semantics) for validation
# ----------------------------------------------------------------------------
def gat_reference(x, edge_index, params, *, nheads, nhid, noutput, negative_slope):
    n = x.shape[0]
    adj = jnp.zeros((n, n), jnp.float32)
    adj = adj.at[edge_index[1], edge_index[0]].set(1.0)
    adj = adj.at[jnp.arange(n), jnp.arange(n)].set(1.0)

    def conv(h, w, asrc, adst, bias, heads, c, concat):
        xp = (h @ w).reshape(n, heads, c)
        a_s = jnp.einsum("nhc,hc->nh", xp, asrc)
        a_d = jnp.einsum("nhc,hc->nh", xp, adst)
        e = a_d[:, None, :] + a_s[None, :, :]                    # [dst, src, H]
        e = jnp.where(e > 0, e, negative_slope * e)
        e = jnp.where(adj[:, :, None] > 0, e, -jnp.inf)
        attn = jax.nn.softmax(e, axis=1)
        out = jnp.einsum("ijh,jhc->ihc", attn, xp)
        out = out.reshape(n, heads * c) if concat else out.mean(axis=1)
        return out + bias

    h = jax.nn.relu(conv(x, params["w1"], params["asrc1"], params["adst1"],
                         params["bias1"][0], nheads, nhid, True))
    o = jax.nn.relu(conv(h, params["w2"], params["asrc2"], params["adst2"],
                         params["bias2"][0], 1, noutput, False))
    o = ((o - params["bn_m"][0]) / jnp.sqrt(params["bn_v"][0] + 1e-5)
         * params["bn_g"][0] + params["bn_b"][0])
    mu = o.mean(-1, keepdims=True)
    var = ((o - mu) ** 2).mean(-1, keepdims=True)
    return (o - mu) / jnp.sqrt(var + 1e-5) * params["ln_g"][0] + params["ln_b"][0]


# ----------------------------------------------------------------------------
# Main
# ----------------------------------------------------------------------------
if __name__ == "__main__":
    N = 200            # pads to 256 -> 2x2 attention grid with 128x128 tiles
    NFEAT = 8
    NHID = 8
    NOUTPUT = 8
    NHEADS = 2
    NEG_SLOPE = 0.2
    NUM_EDGES = 800

    key = jax.random.PRNGKey(0)
    keys = jax.random.split(key, 17)

    x = jax.random.normal(keys[0], (N, NFEAT), jnp.float32)
    src = jax.random.randint(keys[1], (NUM_EDGES,), 0, N)
    dst = jax.random.randint(keys[2], (NUM_EDGES,), 0, N)
    edge_index = jnp.stack([src, dst]).astype(jnp.int32)        # [2, E]

    def glorot(k, shape):
        fan_in, fan_out = shape[-2], shape[-1]
        lim = (6.0 / (fan_in + fan_out)) ** 0.5
        return jax.random.uniform(k, shape, jnp.float32, -lim, lim)

    params = {
        # GATConv(nfeat, nhid, heads=nheads, concat=True)
        "w1":    glorot(keys[3], (NFEAT, NHEADS * NHID)),
        "asrc1": glorot(keys[4], (NHEADS, NHID)),
        "adst1": glorot(keys[5], (NHEADS, NHID)),
        "bias1": 0.1 * jax.random.normal(keys[9], (1, NHEADS * NHID), jnp.float32),
        # GATConv(nhid*nheads, noutput, heads=1, concat=False)
        "w2":    glorot(keys[6], (NHEADS * NHID, NOUTPUT)),
        "asrc2": glorot(keys[7], (1, NOUTPUT)),
        "adst2": glorot(keys[8], (1, NOUTPUT)),
        "bias2": 0.1 * jax.random.normal(keys[10], (1, NOUTPUT), jnp.float32),
        # BatchNorm1d(noutput), eval mode (running stats)
        "bn_g": 1.0 + 0.1 * jax.random.normal(keys[11], (1, NOUTPUT), jnp.float32),
        "bn_b": 0.1 * jax.random.normal(keys[12], (1, NOUTPUT), jnp.float32),
        "bn_m": 0.1 * jax.random.normal(keys[13], (1, NOUTPUT), jnp.float32),
        "bn_v": 1.0 + 0.25 * jax.random.uniform(keys[14], (1, NOUTPUT), jnp.float32),
        # LayerNorm(noutput)
        "ln_g": 1.0 + 0.1 * jax.random.normal(keys[15], (1, NOUTPUT), jnp.float32),
        "ln_b": 0.1 * jax.random.normal(keys[16], (1, NOUTPUT), jnp.float32),
    }

    out = gat_forward(x, edge_index, params,
                      nheads=NHEADS, nhid=NHID, noutput=NOUTPUT,
                      negative_slope=NEG_SLOPE, tile_dst=128, tile_src=128)
    out = jax.block_until_ready(out)
    assert out.shape == (N, NOUTPUT)
    assert bool(jnp.all(jnp.isfinite(out)))

    ref = gat_reference(x, edge_index, params,
                        nheads=NHEADS, nhid=NHID, noutput=NOUTPUT,
                        negative_slope=NEG_SLOPE)
    # Loose tolerance: bf16 aggregation matmuls + EUP approx reciprocal.
    np.testing.assert_allclose(np.asarray(out), np.asarray(ref),
                               rtol=0.1, atol=0.1)
    print("KERNEL_OK")
</pallas_src>

<mosaic_0001>
module attributes {stable_mosaic.version = 11 : i64} {
  func.func @_project_kernel(%arg0: i32, %arg1: memref<128x8xf32, #tpu.memory_space<vmem>>, %arg2: memref<8x16xf32, #tpu.memory_space<vmem>>, %arg3: memref<2x16xf32, #tpu.memory_space<vmem>>, %arg4: memref<16x2xf32, #tpu.memory_space<vmem>>, %arg5: memref<128x16xbf16, #tpu.memory_space<vmem>>, %arg6: memref<2x128xf32, #tpu.memory_space<vmem>>, %arg7: memref<128x2xf32, #tpu.memory_space<vmem>>) attributes {dimension_semantics = [#tpu.dimension_semantics<parallel>], iteration_bounds = array<i64: 2>, scalar_prefetch = 0 : i64, scratch_operands = 0 : i64, tpu.core_type = #tpu.core_type<tc>, window_params = [{transform_indices = @transform_0, window_bounds = array<i64: 128, 8>}, {pipeline_mode = #tpu.pipeline_mode<synchronous>, transform_indices = @transform_1, window_bounds = array<i64: 8, 16>}, {pipeline_mode = #tpu.pipeline_mode<synchronous>, transform_indices = @transform_2, window_bounds = array<i64: 2, 16>}, {pipeline_mode = #tpu.pipeline_mode<synchronous>, transform_indices = @transform_3, window_bounds = array<i64: 16, 2>}, {transform_indices = @transform_4, window_bounds = array<i64: 128, 16>}, {transform_indices = @transform_5, window_bounds = array<i64: 2, 128>}, {transform_indices = @transform_6, window_bounds = array<i64: 128, 2>}]} {
    %c0 = arith.constant 0 : index
    %c0_0 = arith.constant 0 : index
    %0 = vector.load %arg1[%c0, %c0_0] : memref<128x8xf32, #tpu.memory_space<vmem>>, vector<128x8xf32>
    %c0_1 = arith.constant 0 : index
    %c0_2 = arith.constant 0 : index
    %1 = vector.load %arg2[%c0_1, %c0_2] : memref<8x16xf32, #tpu.memory_space<vmem>>, vector<8x16xf32>
    %cst = arith.constant dense<0.000000e+00> : vector<128x16xf32>
    %2 = tpu.matmul %0, %1, %cst {dimension_numbers = #tpu.dot_dimension_numbers<[1], [0], [0], [1], [0, 0, 1, 1], [], []>} : vector<128x8xf32>, vector<8x16xf32>, vector<128x16xf32> -> vector<128x16xf32>
    %3 = arith.truncf %2 : vector<128x16xf32> to vector<128x16xbf16>
    %c0_3 = arith.constant 0 : index
    %c0_4 = arith.constant 0 : index
    %4 = vector.load %arg5[%c0_3, %c0_4] : memref<128x16xbf16, #tpu.memory_space<vmem>>, vector<128x16xbf16>
    tpu.vector_store %arg5[%c0_3, %c0_4], %3 {strides = array<i32>} : memref<128x16xbf16, #tpu.memory_space<vmem>>, vector<128x16xbf16>,
    %c0_5 = arith.constant 0 : index
    %c0_6 = arith.constant 0 : index
    %5 = vector.load %arg3[%c0_5, %c0_6] : memref<2x16xf32, #tpu.memory_space<vmem>>, vector<2x16xf32>
    %cst_7 = arith.constant dense<0.000000e+00> : vector<2x128xf32>
    %6 = tpu.matmul %5, %2, %cst_7 {dimension_numbers = #tpu.dot_dimension_numbers<[1], [1], [0], [0], [0, 0, 1, 0], [], []>} : vector<2x16xf32>, vector<128x16xf32>, vector<2x128xf32> -> vector<2x128xf32>
    %c0_8 = arith.constant 0 : index
    %c0_9 = arith.constant 0 : index
    %7 = vector.load %arg6[%c0_8, %c0_9] : memref<2x128xf32, #tpu.memory_space<vmem>>, vector<2x128xf32>
    tpu.vector_store %arg6[%c0_8, %c0_9], %6 {strides = array<i32>} : memref<2x128xf32, #tpu.memory_space<vmem>>, vector<2x128xf32>,
    %c0_10 = arith.constant 0 : index
    %c0_11 = arith.constant 0 : index
    %8 = vector.load %arg4[%c0_10, %c0_11] : memref<16x2xf32, #tpu.memory_space<vmem>>, vector<16x2xf32>
    %cst_12 = arith.constant dense<0.000000e+00> : vector<128x2xf32>
    %9 = tpu.matmul %2, %8, %cst_12 {dimension_numbers = #tpu.dot_dimension_numbers<[1], [0], [0], [1], [0, 0, 1, 1], [], []>} : vector<128x16xf32>, vector<16x2xf32>, vector<128x2xf32> -> vector<128x2xf32>
    %c0_13 = arith.constant 0 : index
    %c0_14 = arith.constant 0 : index
    %10 = vector.load %arg7[%c0_13, %c0_14] : memref<128x2xf32, #tpu.memory_space<vmem>>, vector<128x2xf32>
    tpu.vector_store %arg7[%c0_13, %c0_14], %9 {strides = array<i32>} : memref<128x2xf32, #tpu.memory_space<vmem>>, vector<128x2xf32>,
    return
  }
  func.func @transform_0(%arg0: i32) -> (i32, i32) {
    %c0_i32 = arith.constant 0 : i32
    %c0_i32_0 = arith.constant 0 : i32
    return %arg0, %c0_i32 : i32, i32
  }
  func.func @transform_1(%arg0: i32) -> (i32, i32) {
    %c0_i32 = arith.constant 0 : i32
    %c0_i32_0 = arith.constant 0 : i32
    %c0_i32_1 = arith.constant 0 : i32
    return %c0_i32, %c0_i32_0 : i32, i32
  }
  func.func @transform_2(%arg0: i32) -> (i32, i32) {
    %c0_i32 = arith.constant 0 : i32
    %c0_i32_0 = arith.constant 0 : i32
    %c0_i32_1 = arith.constant 0 : i32
    return %c0_i32, %c0_i32_0 : i32, i32
  }
  func.func @transform_3(%arg0: i32) -> (i32, i32) {
    %c0_i32 = arith.constant 0 : i32
    %c0_i32_0 = arith.constant 0 : i32
    %c0_i32_1 = arith.constant 0 : i32
    return %c0_i32, %c0_i32_0 : i32, i32
  }
  func.func @transform_4(%arg0: i32) -> (i32, i32) {
    %c0_i32 = arith.constant 0 : i32
    %c0_i32_0 = arith.constant 0 : i32
    return %arg0, %c0_i32 : i32, i32
  }
  func.func @transform_5(%arg0: i32) -> (i32, i32) {
    %c0_i32 = arith.constant 0 : i32
    %c0_i32_0 = arith.constant 0 : i32
    return %c0_i32, %arg0 : i32, i32
  }
  func.func @transform_6(%arg0: i32) -> (i32, i32) {
    %c0_i32 = arith.constant 0 : i32
    %c0_i32_0 = arith.constant 0 : i32
    return %arg0, %c0_i32 : i32, i32
  }
}

</mosaic_0001>

<bundles_post_ra>
// kernel: tpu_custom_call.1
= control target key start
LH: loop header
LB: loop body
LE: loop exit
PB: predicated region body
PF: predicated region fallthrough
CT: control target
= control target key end

     0   :  { %12 = vsyncpa [#allocation3], 0  ;;  %s1692_s0 = inlined_call_operand.vmem [shape: f32[256,8], index: 0, kind: input, shape index: {}]   ;;  %s1693_s1 = inlined_call_operand.vmem [shape: f32[8,16], index: 1, kind: input, shape index: {}]   ;;  %s1694_s2 = inlined_call_operand.vmem [shape: f32[2,16], index: 2, kind: input, shape index: {}]   ;;  %s1695_s3 = inlined_call_operand.vmem [shape: f32[16,2], index: 3, kind: input, shape index: {}]   ;;  %s1696_s4 = inlined_call_operand.vmem [shape: bf16[256,16], index: 4, kind: output, shape index: {0}]   ;;  %s1697_s5 = inlined_call_operand.hbm [shape: f32[2,256], index: 5, kind: output, shape index: {1}]   ;;  %s1698_s6 = inlined_call_operand.vmem [shape: f32[256,2], index: 6, kind: output, shape index: {2}]  }
   0x1   :  { %14 = vsyncpa [#allocation3 + $0x1], 0  ;;  %s1418_s21 = smov 0   ;;  %s1420_s22 = smov 0  }
   0x2   :  { %s1422_s23 = smov 0   ;;  %s1424_s24 = smov 0  }
   0x3 LB: > { %s1439_s25 = sadd.s32 4294967295, %s1377_s24   ;;  %s1000_s26 = sadd.s32 4294967294, %s1377_s24   ;;  %s1377_s24 = sphi %s1424_s24, %s1706_s24   ;;  %s1373_s23 = sphi %s1422_s23, %s1705_s23   ;;  %s1369_s22 = sphi %s1420_s22, %s1704_s22   ;;  %s1365_s21 = sphi %s1418_s21, %s1703_s21  }
   0x4   : > { %s1443_s27 = sadd.s32 1, %s1377_s24   ;;  %s142_s28 = sadd.s32 1, %s1373_s23 }
   0x5   : > { %s139_s29 = ssub.s32 %s1377_s24, %s1443_s27  ;;  %p152_p0 = scmp.ne.s32.totalorder %s1373_s23, %s1369_s22 }
   0x6   : > { %p140_p1 = scmp.eq.s32.totalorder %s139_s29, 0  ;;  %p153_p2 = scmp.eq.s32.totalorder %s1439_s25, 1 }
   0x7   : > { %p158_p3 = scmp.ne.s32.totalorder %s1369_s22, %s1365_s21  ;;  %p159_p4 = scmp.eq.s32.totalorder %s1000_s26, 1 }
   0x8   : > { %s1454_s30 = scalar_select %p140_p1, %s1373_s23, %s142_s28  }
   0x9   : > { %p1456_p5 = por %p153_p2, %p152_p0  ;;  %p1460_p6 = por %p159_p4, %p158_p3 }
   0xa   : > { %p1003_p7 = scmp.ge.s32.totalorder %s1377_s24, 1  ;;  %p221_p8 = scmp.lt.s32.totalorder %s1377_s24, 3 }
   0xc   : > { %p222_p9 = pnand %p1003_p7, %p221_p8 }
   0xd   : > { %v295_v0 = vld [vmem:[%s1693_s1] sm:$0xff] (!%p222_p9)  ;;  %s1005_s11 = sshll.u32 (!%p222_p9), %s1439_s25, 4  ;;  %v696_v2 = vld [vmem:[%s1695_s3 + $0x8] sm:$0xff] (!%p222_p9)  ;;  %vm296_vm0 = vcmask (!%p222_p9), 64512   ;;  %v1379_v20 = vmov (!%p222_p9), 0.0|0.0   ;;  %vm1380_vm1 = vmmov (!%p222_p9), 0  }
   0xe   : > { %225 = sbr.rel (%p222_p9) target bundleno = 530 (0x212), region = 36  ;;  %v695_v1 = vld [vmem:[%s1695_s3] sm:$0xff] (!%p222_p9)  ;;  %1148 = vmatprep.subr.mxu0 (!%p222_p9), %v295_v0  ;;  %p262_p10 = scmp.lt.s32.totalorder (!%p222_p9), %s1005_s11, 31  ;;  %1237 = vmatprep.subr.bf16.mxu1 (!%p222_p9), %v1379_v20  ;;  %v1381_v21 = vmov (!%p222_p9), 0.0   ;;  %vm572_vm2 = vcmask (!%p222_p9), 130048   ;;  %vm554_vm3 = vcmask (!%p222_p9), 125952  }
   0xf   : > { %v1269_v3 = vpack.c.bf16 (!%p222_p9), %v696_v2, %v695_v1  ;;  %1149 = vmatpush3.msra.mxu0 (!%p222_p9), %v295_v0  ;;  %1206 = vmatprep.mubr.msk.f32.mxu1 (!%p222_p9), %vm1380_vm1, %v1381_v21  ;;  %vm1527_vm4 = vmpackc.low (!%p222_p9), %vm572_vm2, %vm572_vm2  ;;  %v571_v63 = vld [vmem:[%s1694_s2] sm:$0x3] (!%p222_p9)  ;;  %vm842_vm5 = vcmask (!%p222_p9), 15360   ;;  %s1077_s18 = sshll.u32 (!%p222_p9), %s1439_s25, 5  ;;  %s1382_s25 = smov (!%p222_p9), [#allocation2]  }
  0x10   : > { %s1652_s26 = scalar_lea.hbm (!%p222_p9), %s1697_s5, %s1077_s18  ;;  %s1319_s9 = sshll.u32 (!%p222_p9), %s1382_s25, 4  ;;  %s1320_s9 = int_to_ptr.vmem [resolvable:$false] %s1319_s9 }
  0x11   : > { %1270 = vmatprep.subr.bf16.mxu0 (!%p222_p9), %v1269_v3  ;;  %s1321_s10 = scalar_lea.vmem (!%p222_p9), %s1320_s9, 64 }
  0x15   : > { %s1708_s11 = smov (!%p262_p10, %s1005_s11), 31 }
  0x16   : > { %s1006_s16 = sshll.u32 %s1708_s11, 3  ;;  %s1008_s20 = sshll.u32 %s1708_s11, 2 }
  0x17   : > { %s1484_s19 = scalar_lea.vmem %s1692_s0, %s1006_s16  ;;  %s1523_s29 = scalar_lea.vmem %s1696_s4, %s1008_s20 }
  0x18   : > { %v279_v4 = vld [vmem:[%s1484_s19] sm:$0xff]  ;;  %v280_v5 = vld [vmem:[%s1484_s19 + $0x8] sm:$0xff]  ;;  %v281_v6 = vld [vmem:[%s1484_s19 + $0x10] sm:$0xff]  ;;  %s1611_s14 = scalar_lea.vmem %s1698_s6, %s1006_s16  ;;  %s251_s11 = sand.u32 1, %s1369_s22  }
  0x19   : > { %1150 = vmatprep.mubr.msk.f32.mxu0 %vm296_vm0, %v279_v4  ;;  %v282_v7 = vld [vmem:[%s1484_s19 + $0x18] sm:$0xff]  ;;  %v283_v8 = vld [vmem:[%s1484_s19 + $0x20] sm:$0xff]  ;;  %v284_v9 = vld [vmem:[%s1484_s19 + $0x28] sm:$0xff]  ;;  %s1004_s15 = sshll.u32 %s251_s11, 1  ;;  %s865_s28 = scalar_lea.sflag [#allocation3], %s251_s11 }
  0x1a   : > { %1151 = vmatmul.mubr.msk.f32.vlgmr.msra.gmra.mrb[0].mxu0 %vm296_vm0, %v280_v5  ;;  %v285_v10 = vld [vmem:[%s1484_s19 + $0x30] sm:$0xff]  ;;  %v286_v11 = vld [vmem:[%s1484_s19 + $0x38] sm:$0xff]  ;;  %v287_v12 = vld [vmem:[%s1484_s19 + $0x40] sm:$0xff]  ;;  %s253_s16 = scalar_lea.vmem [#allocation2], %s1004_s15 }
  0x1b   : > { %1153 = vmatprep.mubr.msk.f32.mxu0 %vm296_vm0, %v281_v6  ;;  %1272 = vmatpush3.bf16.msra.mxu0 %v1269_v3  ;;  %v288_v13 = vld [vmem:[%s1484_s19 + $0x48] sm:$0xff]  ;;  %v289_v14 = vld [vmem:[%s1484_s19 + $0x50] sm:$0xff]  ;;  %v290_v15 = vld [vmem:[%s1484_s19 + $0x58] sm:$0xff]  ;;  %s887_s17 = sshll.u32 %s253_s16, 4  ;;  %s1647_s17 = int_to_ptr.vmem [resolvable:$true] %s887_s17 }
  0x1c   : > { %v291_v16 = vld [vmem:[%s1484_s19 + $0x60] sm:$0xff]  ;;  %v292_v17 = vld [vmem:[%s1484_s19 + $0x68] sm:$0xff]  ;;  %v293_v18 = vld [vmem:[%s1484_s19 + $0x70] sm:$0xff]  ;;  %p1322_p0 = scmp.lt.s32.totalorder %s1647_s17, %s1320_s9 }
  0x1d   : > { %v294_v19 = vld [vmem:[%s1484_s19 + $0x78] sm:$0xff] }
  0x1e   : > { %1154 = vmatmul.mubr.msk.f32.gmra.mrb[2].mxu0 %vm296_vm0, %v282_v7 }
  0x1f   : > { %1156 = vmatprep.mubr.msk.f32.mxu0 %vm296_vm0, %v283_v8 }
  0x22   : > { %1157 = vmatmul.mubr.msk.f32.gmra.mrb[4].mxu0 %vm296_vm0, %v284_v9 }
  0x23   : > { %1159 = vmatprep.mubr.msk.f32.mxu0 %vm296_vm0, %v285_v10 }
  0x26   : > { %1160 = vmatmul.mubr.msk.f32.gmra.mrb[6].mxu0 %vm296_vm0, %v286_v11 }
  0x27   : > { %1162 = vmatprep.mubr.msk.f32.mxu0 %vm296_vm0, %v287_v12 }
  0x2a   : > { %1163 = vmatmul.mubr.msk.f32.gmra.mrb[8].mxu0 %vm296_vm0, %v288_v13 }
  0x2b   : > { %1165 = vmatprep.mubr.msk.f32.mxu0 %vm296_vm0, %v289_v14 }
  0x2e   : > { %1166 = vmatmul.mubr.msk.f32.gmra.mrb[10].mxu0 %vm296_vm0, %v290_v15 }
  0x2f   : > { %1168 = vmatprep.mubr.msk.f32.mxu0 %vm296_vm0, %v291_v16 }
  0x32   : > { %1169 = vmatmul.mubr.msk.f32.gmra.mrb[12].mxu0 %vm296_vm0, %v292_v17 }
  0x33   : > { %1171 = vmatprep.mubr.msk.f32.mxu0 %vm296_vm0, %v293_v18 }
  0x36   : > { %1172 = vmatmul.mubr.msk.f32.gmra.mrb[14].mxu0 %vm296_vm0, %v294_v19 }
  0xed   : > { %v1152_v22 = vpop.f32.mrb[0].mxu0 }
  0xee   : > { %v1081_v23 = vpack.c.bf16 %v1152_v22, %v1152_v22  ;;  %v411_v24 = vpop.f32.mrb[1].mxu0 }
  0xef   : > { %v1080_v26 = vpack.c.bf16 %v411_v24, %v411_v24  ;;  %v1238_v27 = vpack.c.bf16 %v1152_v22, %v411_v24  ;;  %1213 = vmatprep.mubr.msk.f32.mxu0 %vm572_vm2, %v411_v24 }
  0xf0   : > { %556 = vst.msk [vmem:[%s1523_s29 + $0x4] sm:$0xf] %vm554_vm3, %v1081_v23  ;;  %1214 = vmatmul.mubr.msk.f32.vlgmr.msra.gmra.mrb[16].mxu0 %vm572_vm2, %v1152_v22 }
  0xf1   : > { %555 = vst.msk [vmem:[%s1523_s29] sm:$0xf] %vm554_vm3, %v1080_v26  ;;  %1240 = vmatpush3.bf16.xpose.msk.msra.mxu1 %vm1527_vm4, %v1238_v27  ;;  %v1155_v28 = vpop.f32.mrb[2].mxu0 }
  0xf2   : > { %v1083_v29 = vpack.c.bf16 %v1155_v28, %v1155_v28  ;;  %v421_v30 = vpop.f32.mrb[3].mxu0  ;;  %1241 = vmatprep.subr.bf16.mxu1 %v1379_v20 }
  0xf3   : > { %v1082_v31 = vpack.c.bf16 %v421_v30, %v421_v30  ;;  %v1242_v32 = vpack.c.bf16 %v1155_v28, %v421_v30  ;;  %1216 = vmatprep.mubr.msk.f32.mxu0 %vm572_vm2, %v421_v30 }
  0xf4   : > { %558 = vst.msk [vmem:[%s1523_s29 + $0xc] sm:$0xf] %vm554_vm3, %v1083_v29  ;;  %1217 = vmatmul.mubr.msk.f32.gmra.mrb[18].mxu0 %vm572_vm2, %v1155_v28 }
  0xf5   : > { %557 = vst.msk [vmem:[%s1523_s29 + $0x8] sm:$0xf] %vm554_vm3, %v1082_v31  ;;  %v1158_v33 = vpop.f32.mrb[4].mxu0 }
  0xf6   : > { %v1085_v34 = vpack.c.bf16 %v1158_v33, %v1158_v33  ;;  %v431_v35 = vpop.f32.mrb[5].mxu0 }
  0xf7   : > { %v1084_v36 = vpack.c.bf16 %v431_v35, %v431_v35  ;;  %v1246_v37 = vpack.c.bf16 %v1158_v33, %v431_v35  ;;  %1219 = vmatprep.mubr.msk.f32.mxu0 %vm572_vm2, %v431_v35 }
  0xf8   : > { %560 = vst.msk [vmem:[%s1523_s29 + $0x14] sm:$0xf] %vm554_vm3, %v1085_v34  ;;  %1220 = vmatmul.mubr.msk.f32.gmra.mrb[20].mxu0 %vm572_vm2, %v1158_v33 }
  0xf9   : > { %1244 = vmatpush3.bf16.xpose.msk.msra.mxu1 %vm1527_vm4, %v1242_v32  ;;  %559 = vst.msk [vmem:[%s1523_s29 + $0x10] sm:$0xf] %vm554_vm3, %v1084_v36  ;;  %v1161_v38 = vpop.f32.mrb[6].mxu0 }
  0xfa   : > { %1245 = vmatprep.subr.bf16.mxu1 %v1379_v20  ;;  %v1087_v39 = vpack.c.bf16 %v1161_v38, %v1161_v38  ;;  %v441_v40 = vpop.f32.mrb[7].mxu0 }
  0xfb   : > { %v1086_v41 = vpack.c.bf16 %v441_v40, %v441_v40  ;;  %v1250_v42 = vpack.c.bf16 %v1161_v38, %v441_v40  ;;  %1222 = vmatprep.mubr.msk.f32.mxu0 %vm572_vm2, %v441_v40 }
  0xfc   : > { %562 = vst.msk [vmem:[%s1523_s29 + $0x1c] sm:$0xf] %vm554_vm3, %v1087_v39  ;;  %1223 = vmatmul.mubr.msk.f32.gmra.mrb[22].mxu0 %vm572_vm2, %v1161_v38 }
  0xfd   : > { %561 = vst.msk [vmem:[%s1523_s29 + $0x18] sm:$0xf] %vm554_vm3, %v1086_v41  ;;  %v1164_v43 = vpop.f32.mrb[8].mxu0 }
  0xfe   : > { %v1089_v44 = vpack.c.bf16 %v1164_v43, %v1164_v43  ;;  %v451_v45 = vpop.f32.mrb[9].mxu0 }
  0xff   : > { %v1088_v46 = vpack.c.bf16 %v451_v45, %v451_v45  ;;  %v1254_v47 = vpack.c.bf16 %v1164_v43, %v451_v45  ;;  %1225 = vmatprep.mubr.msk.f32.mxu0 %vm572_vm2, %v451_v45 }
 0x100   : > { %564 = vst.msk [vmem:[%s1523_s29 + $0x24] sm:$0xf] %vm554_vm3, %v1089_v44  ;;  %1226 = vmatmul.mubr.msk.f32.gmra.mrb[24].mxu0 %vm572_vm2, %v1164_v43 }
 0x101   : > { %1248 = vmatpush3.bf16.xpose.msk.msra.mxu1 %vm1527_vm4, %v1246_v37  ;;  %563 = vst.msk [vmem:[%s1523_s29 + $0x20] sm:$0xf] %vm554_vm3, %v1088_v46  ;;  %v1167_v48 = vpop.f32.mrb[10].mxu0 }
 0x102   : > { %1249 = vmatprep.subr.bf16.mxu1 %v1379_v20  ;;  %v1091_v49 = vpack.c.bf16 %v1167_v48, %v1167_v48  ;;  %v461_v50 = vpop.f32.mrb[11].mxu0 }
 0x103   : > { %v1090_v51 = vpack.c.bf16 %v461_v50, %v461_v50  ;;  %v1258_v52 = vpack.c.bf16 %v1167_v48, %v461_v50  ;;  %1228 = vmatprep.mubr.msk.f32.mxu0 %vm572_vm2, %v461_v50 }
 0x104   : > { %566 = vst.msk [vmem:[%s1523_s29 + $0x2c] sm:$0xf] %vm554_vm3, %v1091_v49  ;;  %1229 = vmatmul.mubr.msk.f32.gmra.mrb[26].mxu0 %vm572_vm2, %v1167_v48 }
 0x105   : > { %565 = vst.msk [vmem:[%s1523_s29 + $0x28] sm:$0xf] %vm554_vm3, %v1090_v51  ;;  %v1170_v53 = vpop.f32.mrb[12].mxu0 }
 0x106   : > { %v1093_v54 = vpack.c.bf16 %v1170_v53, %v1170_v53  ;;  %v471_v55 = vpop.f32.mrb[13].mxu0 }
 0x107   : > { %v1092_v56 = vpack.c.bf16 %v471_v55, %v471_v55  ;;  %v1262_v57 = vpack.c.bf16 %v1170_v53, %v471_v55  ;;  %1231 = vmatprep.mubr.msk.f32.mxu0 %vm572_vm2, %v471_v55 }
 0x108   : > { %568 = vst.msk [vmem:[%s1523_s29 + $0x34] sm:$0xf] %vm554_vm3, %v1093_v54  ;;  %1232 = vmatmul.mubr.msk.f32.gmra.mrb[28].mxu0 %vm572_vm2, %v1170_v53 }
 0x109   : > { %1252 = vmatpush3.bf16.xpose.msk.msra.mxu1 %vm1527_vm4, %v1250_v42  ;;  %567 = vst.msk [vmem:[%s1523_s29 + $0x30] sm:$0xf] %vm554_vm3, %v1092_v56  ;;  %v1173_v58 = vpop.f32.mrb[14].mxu0 }
 0x10a   : > { %1253 = vmatprep.subr.bf16.mxu1 %v1379_v20  ;;  %v1095_v59 = vpack.c.bf16 %v1173_v58, %v1173_v58  ;;  %v481_v60 = vpop.f32.mrb[15].mxu0 }
 0x10b   : > { %v1094_v61 = vpack.c.bf16 %v481_v60, %v481_v60  ;;  %v1266_v62 = vpack.c.bf16 %v1173_v58, %v481_v60  ;;  %1234 = vmatprep.mubr.msk.f32.mxu0 %vm572_vm2, %v481_v60 }
 0x10c   : > { %570 = vst.msk [vmem:[%s1523_s29 + $0x3c] sm:$0xf] %vm554_vm3, %v1095_v59  ;;  %1235 = vmatmul.mubr.msk.f32.gmra.mrb[30].mxu0 %vm572_vm2, %v1173_v58 }
 0x10d   : > { %569 = vst.msk [vmem:[%s1523_s29 + $0x38] sm:$0xf] %vm554_vm3, %v1094_v61  ;;  %s1315_s29 = scalar_lea.vmem %s1647_s17, 32 }
 0x10e   : > { %p1316_p11 = scmp.ne.s32.totalorder %s1647_s17, %s1315_s29  ;;  %p1323_p1 = scmp.lt.s32.totalorder %s1321_s10, %s1315_s29 }
 0x110   : > { %p1317_p12 = pnand %p1316_p11, %p1456_p5  ;;  %p1324_p2 = por %p1323_p1, %p1322_p0 }
 0x111   : > { %1256 = vmatpush3.bf16.xpose.msk.msra.mxu1 %vm1527_vm4, %v1254_v47 }
 0x112   : > { %1257 = vmatprep.subr.bf16.mxu1 %v1379_v20  ;;  %p1318_p13 = pneg %p1317_p12 }
 0x114   : > { %p1325_p3 = pnand %p1324_p2, %p1318_p13 }
 0x119   : > { %1260 = vmatpush3.bf16.xpose.msk.msra.mxu1 %vm1527_vm4, %v1258_v52 }
 0x11a   : > { %1261 = vmatprep.subr.bf16.mxu1 %v1379_v20 }
 0x121   : > { %1264 = vmatpush3.bf16.xpose.msk.msra.mxu1 %vm1527_vm4, %v1262_v57 }
 0x122   : > { %1265 = vmatprep.subr.bf16.mxu1 %v1379_v20 }
 0x129   : > { %1268 = vmatpush3.bf16.xpose.msk.msra.mxu1 %vm1527_vm4, %v1266_v62 }
 0x130   : > { %1207 = vmatmul.mubr.msk.f32.vlgmr.msra.gmra.mrb[0].mxu1 %vm572_vm2, %v571_v63 }
 0x1c3   : > { %v1215_v0 = vpop.f32.mrb[16].mxu0 }
 0x1c4   : > { %844 = vst.msk [vmem:[%s1611_s14 + $0x8] sm:$0xff] %vm842_vm5, %v1215_v0  ;;  %v763_v1 = vpop.f32.mrb[17].mxu0 }
 0x1c5   : > { %843 = vst.msk [vmem:[%s1611_s14] sm:$0xff] %vm842_vm5, %v763_v1 }
 0x1c7   : > { %v1218_v2 = vpop.f32.mrb[18].mxu0 }
 0x1c8   : > { %846 = vst.msk [vmem:[%s1611_s14 + $0x18] sm:$0xff] %vm842_vm5, %v1218_v2  ;;  %v773_v3 = vpop.f32.mrb[19].mxu0 }
 0x1c9   : > { %845 = vst.msk [vmem:[%s1611_s14 + $0x10] sm:$0xff] %vm842_vm5, %v773_v3 }
 0x1cb   : > { %v1221_v4 = vpop.f32.mrb[20].mxu0 }
 0x1cc   : > { %848 = vst.msk [vmem:[%s1611_s14 + $0x28] sm:$0xff] %vm842_vm5, %v1221_v4  ;;  %v783_v5 = vpop.f32.mrb[21].mxu0 }
 0x1cd   : > { %847 = vst.msk [vmem:[%s1611_s14 + $0x20] sm:$0xff] %vm842_vm5, %v783_v5 }
 0x1cf   : > { %v1224_v6 = vpop.f32.mrb[22].mxu0 }
 0x1d0   : > { %850 = vst.msk [vmem:[%s1611_s14 + $0x38] sm:$0xff] %vm842_vm5, %v1224_v6  ;;  %v793_v7 = vpop.f32.mrb[23].mxu0 }
 0x1d1   : > { %849 = vst.msk [vmem:[%s1611_s14 + $0x30] sm:$0xff] %vm842_vm5, %v793_v7 }
 0x1d3   : > { %v1227_v8 = vpop.f32.mrb[24].mxu0 }
 0x1d4   : > { %852 = vst.msk [vmem:[%s1611_s14 + $0x48] sm:$0xff] %vm842_vm5, %v1227_v8  ;;  %v803_v9 = vpop.f32.mrb[25].mxu0 }
 0x1d5   : > { %851 = vst.msk [vmem:[%s1611_s14 + $0x40] sm:$0xff] %vm842_vm5, %v803_v9 }
 0x1d7   : > { %v1230_v10 = vpop.f32.mrb[26].mxu0 }
 0x1d8   : > { %854 = vst.msk [vmem:[%s1611_s14 + $0x58] sm:$0xff] %vm842_vm5, %v1230_v10  ;;  %v813_v11 = vpop.f32.mrb[27].mxu0 }
 0x1d9   : > { %853 = vst.msk [vmem:[%s1611_s14 + $0x50] sm:$0xff] %vm842_vm5, %v813_v11 }
 0x1db   : > { %v1233_v12 = vpop.f32.mrb[28].mxu0 }
 0x1dc   : > { %856 = vst.msk [vmem:[%s1611_s14 + $0x68] sm:$0xff] %vm842_vm5, %v1233_v12  ;;  %v823_v13 = vpop.f32.mrb[29].mxu0 }
 0x1dd   : > { %855 = vst.msk [vmem:[%s1611_s14 + $0x60] sm:$0xff] %vm842_vm5, %v823_v13 }
 0x1df   : > { %v1236_v14 = vpop.f32.mrb[30].mxu0 }
 0x1e0   : > { %858 = vst.msk [vmem:[%s1611_s14 + $0x78] sm:$0xff] %vm842_vm5, %v1236_v14  ;;  %v833_v15 = vpop.f32.mrb[31].mxu0 }
 0x1e1   : > { %857 = vst.msk [vmem:[%s1611_s14 + $0x70] sm:$0xff] %vm842_vm5, %v833_v15 }
 0x203   : > { %v690_v16 = vpop.f32.mrb[0].mxu1 }
 0x204   : > { %694 = vst [vmem:[%s253_s16] sm:$0x3] %v690_v16  ;;  %v1208_v17 = vpop.f32.mrb[1].mxu1 }
 0x205   : > { %1328 = shalt.err (!%p1325_p3)
}
 0x206   : > { %s1329_s12 = scalar_lea.hbm %s1652_s26, 32  ;;  %s1333_s11 = scalar_lea.hbm %s1697_s5, 64 }
 0x207   : > { %p1330_p4 = scmp.ne.s32.totalorder %s1652_s26, %s1329_s12  ;;  %p1334_p9 = scmp.lt.u32.totalorder %s1652_s26, %s1697_s5 }
 0x208   : > { %p1335_p10 = scmp.lt.u32.totalorder %s1333_s11, %s1329_s12  ;;  %p1337_p12 = scmp.lt.u32.totalorder %s1329_s12, %s1652_s26 }
 0x209   : > { %p1331_p7 = pnand %p1330_p4, %p1456_p5 }
 0x20a   : > { %p1336_p11 = por %p1335_p10, %p1334_p9 }
 0x20b   : > { %p1332_p8 = pneg %p1331_p7 }
 0x20c   : > { %p1338_p13 = por %p1337_p12, %p1336_p11 }
 0x20e   : > { %p1339_p0 = pnand %p1338_p13, %p1332_p8 }
 0x210   : > { %1342 = shalt.err (!%p1339_p0)
}
 0x211   : > { %1273 = dma.vmem_to_hbm [thread:$0]  (%p1456_p5), %s1647_s17, 32, %s1652_s26, %s865_s28  }
 0x212 PF: > { %p1279_p1 = scmp.ge.s32.totalorder %s1377_s24, 2  ;;  %s911_s18 = sand.u32 1, %s1365_s21  }
 0x213   : > { %s912_s19 = scalar_lea.sflag [#allocation3], %s911_s18 }
 0x214   : > { %p1276_p2 = pnand %p1279_p1, %p1460_p6 }
 0x216   : > { %1360 = dma.done.wait (!%p1276_p2), %s912_s19, 32  }
 0x217   : > { %1362 = vsyncadd (!%p1276_p2), %s912_s19, 4294967264  ;;  %p17_p3 = scmp.ge.s32.totalorder %s1443_s27, 4   ;;  %s1703_s21 = smov %s1369_s22 }
 0x218   : > { %s1704_s22 = smov %s1373_s23  ;;  %s1705_s23 = smov %s1454_s30 }
 0x219   : > { %s1706_s24 = smov %s1443_s27  ;;  %19 = sbr.rel (!%p17_p3) target bundleno = 3 (0x3), region = 95 }
 0x220   :  { %925 = vsyncpa [#allocation3], 1 }
 0x221   :  { %927 = vsyncpa [#allocation3 + $0x1], 1 }

</bundles_post_ra>
